<compile_context>
chip_gen: v6e
topology: v6e:2x2x1
jax: 0.10.0
libtpu: 0.0.40
codegen_flags: <defaults>
</compile_context>

<pallas_src>
import jax
import jax.numpy as jnp
from jax.experimental import pallas as pl
from jax.experimental.pallas import tpu as pltpu

LANE = 128        # vreg lane width
SUBLANE = 8       # f32 sublanes per vreg

# Gridless single-tile path only for slabs <= 64 KiB (128 rows x 128 lanes f32).
SMALL_ROWS = 128
# Aim for at least this many grid blocks on mid-size inputs so input/output
# DMAs actually pipeline (software pipelining needs > 1 step).
MIN_BLOCKS = 4


def _round_up(a, m):
    return -(-a // m) * m


def _tiling_defaults():
    """Pick (max_tile_rows, vmem_limit_bytes) per TPU generation.

    Default (v5e / v6e / unknown): 8192-row (4 MiB) tiles; input + output
    double-buffered = 16 MiB under an explicit 32 MiB scoped-VMEM limit.
    v7x (64 MiB physical VMEM per TC): 16384-row (8 MiB) tiles, 32 MiB of
    buffers, 48 MiB limit.
    """
    max_tile_rows, vmem_limit = 8192, 32 * 1024 * 1024
    try:
        if pltpu.get_tpu_info().vmem_capacity_bytes <= 64 * 1024 * 1024:
            max_tile_rows, vmem_limit = 16384, 48 * 1024 * 1024
    except Exception:
        pass  # fall back to settings that are safe on every generation
    return max_tile_rows, vmem_limit


MAX_TILE_ROWS, VMEM_LIMIT = _tiling_defaults()


def lr_kernel(w_ref, b_ref, x_ref, o_ref):
    # w_ref: SMEM (1, 1) scalar weight, b_ref: SMEM (1,) scalar bias.
    # x_ref / o_ref: lane-dense VMEM tiles of shape (tile_rows, 128).
    o_ref[...] = x_ref[...] * w_ref[0, 0] + b_ref[0]


@jax.jit
def lr_forward(x, weight, bias):
    """Forward pass of Lr: out = x @ weight.T + bias, x: [N, 1]."""
    n, in_f = x.shape
    assert in_f == 1 and weight.shape == (1, 1) and bias.shape == (1,)
    dtype = x.dtype
    # TODO(synk): layout plumbing assumes f32; bf16 would change sublane
    # packing (16, 128) and tile divisibility.

    # Lane-dense re-layout: [N, 1] puts the size-1 axis on the 128-wide lane
    # dimension (worst case). Flatten, pad only up to a multiple of LANE, and
    # present a (rows, 128) slab; row-direction raggedness is handled by
    # Pallas' masked trailing block (no extra HBM pad/slice pass).
    n_pad = _round_up(n, LANE)
    x_flat = x.reshape(n)
    if n_pad != n:
        x_flat = jnp.pad(x_flat, (0, n_pad - n))
    rows = n_pad // LANE
    x_slab = x_flat.reshape(rows, LANE)

    if rows <= SMALL_ROWS:
        # Truly tiny: one VMEM tile, no grid. (At this scale the pallas_call
        # launch dominates anyway — in a real model this op would simply be
        # fused into surrounding XLA.)
        out_slab = pl.pallas_call(
            lr_kernel,
            out_shape=jax.ShapeDtypeStruct((rows, LANE), dtype),
            in_specs=[
                pl.BlockSpec(memory_space=pltpu.MemorySpace.SMEM),  # weight
                pl.BlockSpec(memory_space=pltpu.MemorySpace.SMEM),  # bias
                pl.BlockSpec(memory_space=pltpu.MemorySpace.VMEM),  # x slab
            ],
            out_specs=pl.BlockSpec(memory_space=pltpu.MemorySpace.VMEM),
            input_output_aliases={2: 0},  # result written in place of the slab
        )(weight, bias, x_slab)
    else:
        # Pipelined path: big lane-dense tiles, >= MIN_BLOCKS grid steps so
        # in/out DMAs overlap; ragged last block is masked by Pallas.
        tile_rows = min(MAX_TILE_ROWS,
                        _round_up(pl.cdiv(rows, MIN_BLOCKS), SUBLANE))
        grid = (pl.cdiv(rows, tile_rows),)
        out_slab = pl.pallas_call(
            lr_kernel,
            out_shape=jax.ShapeDtypeStruct((rows, LANE), dtype),
            grid=grid,
            in_specs=[
                pl.BlockSpec(memory_space=pltpu.MemorySpace.SMEM),   # weight
                pl.BlockSpec(memory_space=pltpu.MemorySpace.SMEM),   # bias
                pl.BlockSpec((tile_rows, LANE), lambda i: (i, 0)),   # x tile
            ],
            out_specs=pl.BlockSpec((tile_rows, LANE), lambda i: (i, 0)),
            input_output_aliases={2: 0},  # result written in place of the slab
            compiler_params=pltpu.CompilerParams(
                dimension_semantics=("parallel",),   # shards across v7x's 2 TCs
                vmem_limit_bytes=VMEM_LIMIT,
            ),
        )(weight, bias, x_slab)

    # Undo the layout plumbing: back to [N, 1]. For N % 128 == 0 these
    # reshapes are bitcasts; otherwise a single trailing slice.
    return out_slab.reshape(n_pad)[:n].reshape(n, 1)


if __name__ == "__main__":
    key = jax.random.PRNGKey(0)
    k_x, k_w, k_b = jax.random.split(key, 3)

    # Input matching the PyTorch script: x = torch.rand([50, 1])
    x = jax.random.uniform(k_x, (50, 1), dtype=jnp.float32)

    # Deterministic nn.Linear(1, 1) init: U(-1/sqrt(in_f), 1/sqrt(in_f)) = U(-1, 1)
    weight = jax.random.uniform(k_w, (1, 1), dtype=jnp.float32,
                                minval=-1.0, maxval=1.0)
    bias = jax.random.uniform(k_b, (1,), dtype=jnp.float32,
                              minval=-1.0, maxval=1.0)

    out = lr_forward(x, weight, bias)
    jax.block_until_ready(out)

    ref = x @ weight.T + bias
    assert out.shape == (50, 1)
    assert jnp.allclose(out, ref, atol=1e-6), "mismatch vs reference (small)"

    # Also exercise the pipelined grid path once (ragged last block + mid-size
    # tile selection) — still tiny data by TPU standards (~2 MiB).
    n_big = 128 * 4096 + 333
    x_big = jax.random.uniform(jax.random.PRNGKey(1), (n_big, 1),
                               dtype=jnp.float32)
    out_big = lr_forward(x_big, weight, bias)
    jax.block_until_ready(out_big)
    ref_big = x_big @ weight.T + bias
    assert out_big.shape == (n_big, 1)
    assert jnp.allclose(out_big, ref_big, atol=1e-6), "mismatch vs reference (big)"

    print("KERNEL_OK")
</pallas_src>

<mosaic_0001>
module attributes {stable_mosaic.version = 11 : i64} {
  func.func @lr_kernel(%arg0: memref<1x1xf32, #tpu.memory_space<smem>>, %arg1: memref<1xf32, #tpu.memory_space<smem>>, %arg2: memref<1x128xf32, #tpu.memory_space<vmem>>, %arg3: memref<1x128xf32, #tpu.memory_space<vmem>>) attributes {dimension_semantics = [], scalar_prefetch = 0 : i64, scratch_operands = 0 : i64, tpu.core_type = #tpu.core_type<tc>} {
    %c0 = arith.constant 0 : index
    %c0_0 = arith.constant 0 : index
    %0 = vector.load %arg2[%c0, %c0_0] : memref<1x128xf32, #tpu.memory_space<vmem>>, vector<1x128xf32>
    %c0_1 = arith.constant 0 : index
    %c0_2 = arith.constant 0 : index
    %1 = memref.load %arg0[%c0_1, %c0_2] : memref<1x1xf32, #tpu.memory_space<smem>>
    %2 = vector.broadcast %1 : f32 to vector<1x128xf32>
    %3 = arith.mulf %0, %2 : vector<1x128xf32>
    %c0_3 = arith.constant 0 : index
    %4 = memref.load %arg1[%c0_3] : memref<1xf32, #tpu.memory_space<smem>>
    %5 = vector.broadcast %4 : f32 to vector<1x128xf32>
    %6 = arith.addf %3, %5 : vector<1x128xf32>
    %c0_4 = arith.constant 0 : index
    %c0_5 = arith.constant 0 : index
    %7 = vector.load %arg3[%c0_4, %c0_5] : memref<1x128xf32, #tpu.memory_space<vmem>>, vector<1x128xf32>
    tpu.vector_store %arg3[%c0_4, %c0_5], %6 {strides = array<i32>} : memref<1x128xf32, #tpu.memory_space<vmem>>, vector<1x128xf32>,
    return
  }
}

</mosaic_0001>

<bundles_post_ra>
// kernel: lr_forward.1
= control target key start
LH: loop header
LB: loop body
LE: loop exit
PB: predicated region body
PF: predicated region fallthrough
CT: control target
= control target key end

     0   :  { %s60_s0 = inlined_call_operand.<no memory space> [shape: f32[1,1], index: 0, kind: input, shape index: {}]   ;;  %s61_s1 = inlined_call_operand.<no memory space> [shape: f32[1], index: 1, kind: input, shape index: {}]   ;;  %s62_s2 = inlined_call_operand.vmem [shape: f32[1,128], index: 2, kind: input, shape index: {}, may-alias: {2,3}]   ;;  %s63_s3 = inlined_call_operand.vmem [shape: f32[1,128], index: 3, kind: output, shape index: {}, may-alias: {2,3}]  }
   0x1   :  { %v16_v0 = vld [vmem:[%s62_s2] sm:$0x1]  ;;  %v18_v1 = vstv %s60_s0  ;;  %v21_v2 = vstv %s61_s1 }
   0x2   :  { %v19_v3 = vmul.f32 %v18_v1, %v16_v0 }
   0x4   :  { %v22_v4 = vadd.f32 %v21_v2, %v19_v3 }
   0x6   :  { %23 = vst [vmem:[%s63_s3] sm:$0x1] %v22_v4 }

</bundles_post_ra>
